<compile_context>
chip_gen: v7x
topology: tpu7x:2x2x1
jax: 0.10.0
libtpu: 0.0.40
codegen_flags: <defaults>
</compile_context>

<pallas_src>
import functools

import jax
import jax.numpy as jnp
from jax.experimental import pallas as pl
from jax.experimental.pallas import tpu as pltpu

POWER_ITERATIONS = 1
EPS = 1e-12


# ----------------------------------------------------------------------------
# Fused kernel: spectral norm (power iteration) + conv via in-VMEM im2col +
# a single MXU matmul per image.
# ----------------------------------------------------------------------------
def _sn_conv_kernel(w_ref, u_ref, b_ref, x_ref, o_ref, patches_ref,
                    *, nb, cin, kh, kw, width, hw, pad, compute_dtype):
    f32 = jnp.float32

    # ---- 1) spectral norm on the tiny flattened weight (Cout x K) ----------
    # VPU broadcast-multiply + cross-lane/sublane reduces + EUP rsqrt; paid
    # once per grid step and amortized over the Nb images of this step.
    wm = w_ref[...].astype(f32)                       # (Cout, K)
    u = u_ref[...].astype(f32)                        # (Cout, 1)
    v = jnp.zeros((1, wm.shape[1]), f32)
    for _ in range(POWER_ITERATIONS):                 # static unroll (=1)
        v = jnp.sum(wm * u, axis=0, keepdims=True)                  # W^T u
        v = v * jax.lax.rsqrt(jnp.sum(v * v) + EPS * EPS)
        u = jnp.sum(wm * v, axis=1, keepdims=True)                  # W v
        u = u * jax.lax.rsqrt(jnp.sum(u * u) + EPS * EPS)
    wv = jnp.sum(wm * v, axis=1, keepdims=True)                     # W v (final v)
    sigma = jnp.sum(u * wv)                                         # u . (W v)
    w_n = (wm * (1.0 / sigma)).astype(compute_dtype)                # fold 1/sigma

    # ---- 2) hoisted, pre-broadcast edge masks (loop/image invariant) -------
    # wpos: per-pixel column coordinate, generated in-kernel (no HBM input).
    wpos = jax.lax.broadcasted_iota(jnp.int32, (1, hw), 1)
    if width > 0 and (width & (width - 1)) == 0:
        wpos = wpos & (width - 1)
    else:
        wpos = wpos % width
    zero = jnp.zeros((), compute_dtype)
    left_masks = {dx: jnp.broadcast_to(wpos < (pad - dx), (cin, hw))
                  for dx in range(kw) if dx < pad}
    right_masks = {dx: jnp.broadcast_to(wpos >= (width + pad - dx), (cin, hw))
                   for dx in range(kw) if dx > pad}

    bias = b_ref[...].astype(f32)                     # (Cout, 1)

    # ---- 3) conv: in-VMEM im2col into scratch + ONE MXU matmul per image ---
    # x_ref[i] is (Cin, Lp): H zero-padded, spatially flattened, front-padded
    # by `pad` zeros, so tap (dy, dx) is the static lane window
    # [dy*W + dx, dy*W + dx + H*W); horizontal out-of-range columns are masked.
    for i in range(nb):                               # static unroll over images
        xf = x_ref[i]                                 # (Cin, Lp) compute dtype
        for dy in range(kh):
            for dx in range(kw):
                start = dy * width + dx
                slab = xf[:, start:start + hw]        # (Cin, HW) static slice
                if dx < pad:                          # left edge is conv padding
                    slab = jnp.where(left_masks[dx], zero, slab)
                if dx > pad:                          # right edge is conv padding
                    slab = jnp.where(right_masks[dx], zero, slab)
                row0 = (dy * kw + dx) * cin
                patches_ref[row0:row0 + cin, :] = slab
        # Single K = kh*kw*Cin contraction: accumulation stays inside the MXU
        # (v7x MRB in-place accumulate; 1 push/drain instead of 9).
        acc = jnp.dot(w_n, patches_ref[...], preferred_element_type=f32) + bias
        o_ref[i] = acc.astype(o_ref.dtype)            # (Cout, HW): 128-lane dense


# ----------------------------------------------------------------------------
# Wrapper: layout plumbing, batch blocking, u/v state update, pallas_call
# ----------------------------------------------------------------------------
@functools.partial(jax.jit, static_argnames=("kh", "kw", "pad", "compute_dtype"))
def spectral_norm_conv_forward(x, w_bar, bias, u, v, kh=3, kw=3, pad=1,
                               compute_dtype=jnp.float32):
    """SpectralNorm(Conv2d).forward. x: (N,Cin,H,W) NCHW. Returns (out, u_new, v_new)."""
    N, Cin, H, W = x.shape
    Cout = w_bar.shape[0]
    K = Cin * kh * kw
    HW = H * W
    Hp = H + 2 * pad

    # Cheap O(K) re-layout: weight columns in tap-major / channel-minor order so
    # each (dy, dx) tap occupies a contiguous K-slice matching the patch scratch
    # row layout; sigma / the power iteration are invariant under it.
    w_p = w_bar.transpose(0, 2, 3, 1).reshape(Cout, K)               # (Cout, kh*kw*Cin)
    u_c = u.reshape(Cout, 1)
    b_c = bias.reshape(Cout, 1)

    # Input: zero-pad H, flatten spatial dims, prepend `pad` zeros (absorbs the
    # dx - pad shift) and round the lane dim up to a multiple of 128.
    need = max(pad + Hp * W, (kh - 1) * W + (kw - 1) + HW)
    Lp = ((need + 127) // 128) * 128

    # Batch blocking: amortize the per-grid-step fixed cost (power iteration,
    # 1/sigma fold, ~0.35 us DMA/step overhead). Keep grid >= 2 when N >= 2 so
    # both v7x TensorCores get work; cap Nb by a conservative VMEM budget.
    itemsize = jnp.dtype(compute_dtype).itemsize
    bytes_per_img = (Cin * Lp + Cout * HW) * itemsize * 2            # double-buffered
    nb_cap = max(1, (4 << 20) // max(bytes_per_img, 1))
    Nb = max(1, min(nb_cap, (N + 1) // 2)) if N > 1 else 1
    G = -(-N // Nb)
    Npad = G * Nb

    xf = jnp.pad(x, ((0, Npad - N), (0, 0), (pad, pad), (0, 0)))
    xf = xf.reshape(Npad, Cin, Hp * W)
    xf = jnp.pad(xf, ((0, 0), (0, 0), (pad, Lp - pad - Hp * W)))
    xf = xf.astype(compute_dtype)   # bf16 feed halves x DMA (v5e/v6e/v7x MXUs are bf16)

    kernel = functools.partial(_sn_conv_kernel, nb=Nb, cin=Cin, kh=kh, kw=kw,
                               width=W, hw=HW, pad=pad,
                               compute_dtype=compute_dtype)

    out_flat = pl.pallas_call(
        kernel,
        out_shape=jax.ShapeDtypeStruct((Npad, Cout, HW), x.dtype),
        grid=(G,),
        in_specs=[pl.BlockSpec((Cout, K), lambda n: (0, 0)),          # w (permuted)
                  pl.BlockSpec((Cout, 1), lambda n: (0, 0)),          # u column
                  pl.BlockSpec((Cout, 1), lambda n: (0, 0)),          # bias column
                  pl.BlockSpec((Nb, Cin, Lp), lambda n: (n, 0, 0))],  # padded flat x
        out_specs=pl.BlockSpec((Nb, Cout, HW), lambda n: (n, 0, 0)),
        scratch_shapes=[pltpu.VMEM((K, HW), compute_dtype)],          # im2col patches
        compiler_params=pltpu.CompilerParams(
            dimension_semantics=("parallel",)),
    )(w_p, u_c, b_c, xf)

    # (Npad, Cout, H*W) -> NCHW is a slice + pure reshape (no minor-dim transpose).
    out = out_flat[:N].reshape(N, Cout, H, W)

    # u/v state update: O(Cout*K) once per call, faithful to the module's
    # l2normalize (v / (||v|| + eps)); done here instead of redundant per-step
    # masked stores + HBM writebacks from every grid iteration of the kernel.
    wm = w_bar.reshape(Cout, K)
    u_new, v_new = u, v
    for _ in range(POWER_ITERATIONS):
        v_new = wm.T @ u_new
        v_new = v_new / (jnp.linalg.norm(v_new) + EPS)
        u_new = wm @ v_new
        u_new = u_new / (jnp.linalg.norm(u_new) + EPS)
    return out, u_new, v_new


# ----------------------------------------------------------------------------
# Pure-JAX reference (faithful to the PyTorch module)
# ----------------------------------------------------------------------------
def reference_forward(x, w_bar, bias, u, v):
    Cout = w_bar.shape[0]
    wm = w_bar.reshape(Cout, -1)
    for _ in range(POWER_ITERATIONS):
        v = wm.T @ u
        v = v / (jnp.linalg.norm(v) + EPS)
        u = wm @ v
        u = u / (jnp.linalg.norm(u) + EPS)
    sigma = u @ (wm @ v)
    wn = w_bar / sigma
    out = jax.lax.conv_general_dilated(
        x, wn, window_strides=(1, 1), padding=((1, 1), (1, 1)),
        dimension_numbers=("NCHW", "OIHW", "NCHW"))
    return out + bias.reshape(1, -1, 1, 1), u, v


if __name__ == "__main__":
    key = jax.random.PRNGKey(0)
    k_x, k_w, k_b, k_u, k_v = jax.random.split(key, 5)

    N, Cin, H, W = 2, 4, 16, 16
    Cout, kh, kw = 8, 3, 3

    x = jax.random.normal(k_x, (N, Cin, H, W), dtype=jnp.float32)
    w_bar = jax.random.normal(k_w, (Cout, Cin, kh, kw), dtype=jnp.float32) * 0.1
    bias = jax.random.normal(k_b, (Cout,), dtype=jnp.float32) * 0.1

    # u, v initialized N(0,1) then l2-normalized, as in _make_params
    u0 = jax.random.normal(k_u, (Cout,), dtype=jnp.float32)
    v0 = jax.random.normal(k_v, (Cin * kh * kw,), dtype=jnp.float32)
    u0 = u0 / (jnp.linalg.norm(u0) + EPS)
    v0 = v0 / (jnp.linalg.norm(v0) + EPS)

    ref_out, ref_u, ref_v = reference_forward(x, w_bar, bias, u0, v0)

    # --- f32 path (default): strict check -----------------------------------
    out, u_new, v_new = spectral_norm_conv_forward(x, w_bar, bias, u0, v0,
                                                   kh=kh, kw=kw, pad=1)
    out = jax.block_until_ready(out)
    assert out.shape == (N, Cout, H, W)
    assert jnp.allclose(out, ref_out, atol=1e-4, rtol=1e-4), "conv output mismatch"
    assert jnp.allclose(u_new, ref_u, atol=1e-4, rtol=1e-4), "u update mismatch"
    assert jnp.allclose(v_new, ref_v, atol=1e-4, rtol=1e-4), "v update mismatch"

    # --- bf16 MXU-feed path (v5e/v6e/v7x optimization; epilogue stays f32) ---
    out_bf16, _, _ = spectral_norm_conv_forward(x, w_bar, bias, u0, v0,
                                                kh=kh, kw=kw, pad=1,
                                                compute_dtype=jnp.bfloat16)
    out_bf16 = jax.block_until_ready(out_bf16)
    assert jnp.allclose(out_bf16, ref_out, atol=5e-2, rtol=5e-2), "bf16 path mismatch"

    print("KERNEL_OK")
</pallas_src>

<mosaic_0001>
module attributes {stable_mosaic.version = 11 : i64} {
  func.func @_sn_conv_kernel(%arg0: i32, %arg1: memref<8x36xf32, #tpu.memory_space<vmem>>, %arg2: memref<8x1xf32, #tpu.memory_space<vmem>>, %arg3: memref<8x1xf32, #tpu.memory_space<vmem>>, %arg4: memref<1x4x384xf32, #tpu.memory_space<vmem>>, %arg5: memref<1x8x256xf32, #tpu.memory_space<vmem>>, %arg6: memref<36x256xf32, #tpu.memory_space<vmem>>) attributes {dimension_semantics = [#tpu.dimension_semantics<parallel>], iteration_bounds = array<i64: 2>, scalar_prefetch = 0 : i64, scratch_operands = 1 : i64, tpu.core_type = #tpu.core_type<tc>, window_params = [{pipeline_mode = #tpu.pipeline_mode<synchronous>, transform_indices = @transform_0, window_bounds = array<i64: 8, 36>}, {pipeline_mode = #tpu.pipeline_mode<synchronous>, transform_indices = @transform_1, window_bounds = array<i64: 8, 1>}, {pipeline_mode = #tpu.pipeline_mode<synchronous>, transform_indices = @transform_2, window_bounds = array<i64: 8, 1>}, {transform_indices = @transform_3, window_bounds = array<i64: 1, 4, 384>}, {transform_indices = @transform_4, window_bounds = array<i64: 1, 8, 256>}]} {
    %c0 = arith.constant 0 : index
    %c0_0 = arith.constant 0 : index
    %0 = vector.load %arg1[%c0, %c0_0] : memref<8x36xf32, #tpu.memory_space<vmem>>, vector<8x36xf32>
    %c0_1 = arith.constant 0 : index
    %c0_2 = arith.constant 0 : index
    %1 = vector.load %arg2[%c0_1, %c0_2] : memref<8x1xf32, #tpu.memory_space<vmem>>, vector<8x1xf32>
    %2 = vector.broadcast %1 : vector<8x1xf32> to vector<8x36xf32>
    %3 = arith.mulf %0, %2 : vector<8x36xf32>
    %cst = arith.constant dense<0.000000e+00> : vector<36xf32>
    %4 = vector.multi_reduction <add>, %3, %cst [0] : vector<8x36xf32> to vector<36xf32>
    %5 = vector.shape_cast %4 : vector<36xf32> to vector<1x36xf32>
    %6 = arith.mulf %5, %5 : vector<1x36xf32>
    %7 = vector.shape_cast %6 : vector<1x36xf32> to vector<1x1x36xf32>
    %cst_3 = arith.constant dense<0.000000e+00> : vector<1xf32>
    %8 = vector.multi_reduction <add>, %7, %cst_3 [1, 2] : vector<1x1x36xf32> to vector<1xf32>
    %9 = vector.shape_cast %8 : vector<1xf32> to vector<1x1x1xf32>
    %10 = vector.extract %9[0, 0, 0] : f32 from vector<1x1x1xf32>
    %cst_4 = arith.constant 1.000000e-24 : f32
    %11 = arith.addf %10, %cst_4 : f32
    %12 = math.rsqrt %11 : f32
    %13 = vector.broadcast %12 : f32 to vector<1x36xf32>
    %14 = arith.mulf %5, %13 : vector<1x36xf32>
    %15 = vector.broadcast %14 : vector<1x36xf32> to vector<8x36xf32>
    %16 = arith.mulf %0, %15 : vector<8x36xf32>
    %cst_5 = arith.constant dense<0.000000e+00> : vector<8xf32>
    %17 = vector.multi_reduction <add>, %16, %cst_5 [1] : vector<8x36xf32> to vector<8xf32>
    %18 = vector.shape_cast %17 : vector<8xf32> to vector<8x1xf32>
    %19 = arith.mulf %18, %18 : vector<8x1xf32>
    %20 = vector.shape_cast %19 : vector<8x1xf32> to vector<1x8x1xf32>
    %cst_6 = arith.constant dense<0.000000e+00> : vector<1xf32>
    %21 = vector.multi_reduction <add>, %20, %cst_6 [1, 2] : vector<1x8x1xf32> to vector<1xf32>
    %22 = vector.shape_cast %21 : vector<1xf32> to vector<1x1x1xf32>
    %23 = vector.extract %22[0, 0, 0] : f32 from vector<1x1x1xf32>
    %cst_7 = arith.constant 1.000000e-24 : f32
    %24 = arith.addf %23, %cst_7 : f32
    %25 = math.rsqrt %24 : f32
    %26 = vector.broadcast %25 : f32 to vector<8x1xf32>
    %27 = arith.mulf %18, %26 : vector<8x1xf32>
    %28 = vector.broadcast %14 : vector<1x36xf32> to vector<8x36xf32>
    %29 = arith.mulf %0, %28 : vector<8x36xf32>
    %cst_8 = arith.constant dense<0.000000e+00> : vector<8xf32>
    %30 = vector.multi_reduction <add>, %29, %cst_8 [1] : vector<8x36xf32> to vector<8xf32>
    %31 = vector.shape_cast %30 : vector<8xf32> to vector<8x1xf32>
    %32 = arith.mulf %27, %31 : vector<8x1xf32>
    %33 = vector.shape_cast %32 : vector<8x1xf32> to vector<1x8x1xf32>
    %cst_9 = arith.constant dense<0.000000e+00> : vector<1xf32>
    %34 = vector.multi_reduction <add>, %33, %cst_9 [1, 2] : vector<1x8x1xf32> to vector<1xf32>
    %35 = vector.shape_cast %34 : vector<1xf32> to vector<1x1x1xf32>
    %36 = vector.extract %35[0, 0, 0] : f32 from vector<1x1x1xf32>
    %cst_10 = arith.constant 1.000000e+00 : f32
    %37 = arith.divf %cst_10, %36 : f32
    %38 = vector.broadcast %37 : f32 to vector<8x36xf32>
    %39 = arith.mulf %0, %38 : vector<8x36xf32>
    %40 = tpu.iota {dimensions = array<i32: 1>} : vector<1x256xi32>
    %c15_i32 = arith.constant 15 : i32
    %41 = vector.broadcast %c15_i32 : i32 to vector<1x256xi32>
    %42 = arith.andi %40, %41 : vector<1x256xi32>
    %c1_i32 = arith.constant 1 : i32
    %43 = vector.broadcast %c1_i32 : i32 to vector<1x256xi32>
    %44 = arith.cmpi slt, %42, %43 : vector<1x256xi32>
    %45 = vector.shape_cast %44 : vector<1x256xi1> to vector<1x256xi1>
    %46 = vector.broadcast %45 : vector<1x256xi1> to vector<4x256xi1>
    %c15_i32_11 = arith.constant 15 : i32
    %47 = vector.broadcast %c15_i32_11 : i32 to vector<1x256xi32>
    %48 = arith.cmpi sge, %42, %47 : vector<1x256xi32>
    %49 = vector.shape_cast %48 : vector<1x256xi1> to vector<1x256xi1>
    %50 = vector.broadcast %49 : vector<1x256xi1> to vector<4x256xi1>
    %c0_12 = arith.constant 0 : index
    %c0_13 = arith.constant 0 : index
    %51 = vector.load %arg3[%c0_12, %c0_13] : memref<8x1xf32, #tpu.memory_space<vmem>>, vector<8x1xf32>
    %c0_14 = arith.constant 0 : index
    %c0_15 = arith.constant 0 : index
    %c0_16 = arith.constant 0 : index
    %52 = vector.load %arg4[%c0_14, %c0_15, %c0_16] : memref<1x4x384xf32, #tpu.memory_space<vmem>>, vector<1x4x384xf32>
    %53 = vector.shape_cast %52 : vector<1x4x384xf32> to vector<4x384xf32>
    %54 = vector.extract_strided_slice %53 {offsets = [0, 0], sizes = [4, 256], strides = [1, 1]} : vector<4x384xf32> to vector<4x256xf32>
    %cst_17 = arith.constant 0.000000e+00 : f32
    %55 = vector.broadcast %cst_17 : f32 to vector<4x256xf32>
    %56 = arith.select %46, %55, %54 : vector<4x256xi1>, vector<4x256xf32>
    %c0_18 = arith.constant 0 : index
    %c0_19 = arith.constant 0 : index
    %57 = vector.load %arg6[%c0_18, %c0_19] : memref<36x256xf32, #tpu.memory_space<vmem>>, vector<4x256xf32>
    tpu.vector_store %arg6[%c0_18, %c0_19], %56 {strides = array<i32>} : memref<36x256xf32, #tpu.memory_space<vmem>>, vector<4x256xf32>,
    %58 = vector.extract_strided_slice %53 {offsets = [0, 1], sizes = [4, 256], strides = [1, 1]} : vector<4x384xf32> to vector<4x256xf32>
    %c4 = arith.constant 4 : index
    %c0_20 = arith.constant 0 : index
    %59 = vector.load %arg6[%c4, %c0_20] : memref<36x256xf32, #tpu.memory_space<vmem>>, vector<4x256xf32>
    tpu.vector_store %arg6[%c4, %c0_20], %58 {strides = array<i32>} : memref<36x256xf32, #tpu.memory_space<vmem>>, vector<4x256xf32>,
    %60 = vector.extract_strided_slice %53 {offsets = [0, 2], sizes = [4, 256], strides = [1, 1]} : vector<4x384xf32> to vector<4x256xf32>
    %cst_21 = arith.constant 0.000000e+00 : f32
    %61 = vector.broadcast %cst_21 : f32 to vector<4x256xf32>
    %62 = arith.select %50, %61, %60 : vector<4x256xi1>, vector<4x256xf32>
    %c8 = arith.constant 8 : index
    %c0_22 = arith.constant 0 : index
    %63 = vector.load %arg6[%c8, %c0_22] : memref<36x256xf32, #tpu.memory_space<vmem>>, vector<4x256xf32>
    tpu.vector_store %arg6[%c8, %c0_22], %62 {strides = array<i32>} : memref<36x256xf32, #tpu.memory_space<vmem>>, vector<4x256xf32>,
    %64 = vector.extract_strided_slice %53 {offsets = [0, 16], sizes = [4, 256], strides = [1, 1]} : vector<4x384xf32> to vector<4x256xf32>
    %cst_23 = arith.constant 0.000000e+00 : f32
    %65 = vector.broadcast %cst_23 : f32 to vector<4x256xf32>
    %66 = arith.select %46, %65, %64 : vector<4x256xi1>, vector<4x256xf32>
    %c12 = arith.constant 12 : index
    %c0_24 = arith.constant 0 : index
    %67 = vector.load %arg6[%c12, %c0_24] : memref<36x256xf32, #tpu.memory_space<vmem>>, vector<4x256xf32>
    tpu.vector_store %arg6[%c12, %c0_24], %66 {strides = array<i32>} : memref<36x256xf32, #tpu.memory_space<vmem>>, vector<4x256xf32>,
    %68 = vector.extract_strided_slice %53 {offsets = [0, 17], sizes = [4, 256], strides = [1, 1]} : vector<4x384xf32> to vector<4x256xf32>
    %c16 = arith.constant 16 : index
    %c0_25 = arith.constant 0 : index
    %69 = vector.load %arg6[%c16, %c0_25] : memref<36x256xf32, #tpu.memory_space<vmem>>, vector<4x256xf32>
    tpu.vector_store %arg6[%c16, %c0_25], %68 {strides = array<i32>} : memref<36x256xf32, #tpu.memory_space<vmem>>, vector<4x256xf32>,
    %70 = vector.extract_strided_slice %53 {offsets = [0, 18], sizes = [4, 256], strides = [1, 1]} : vector<4x384xf32> to vector<4x256xf32>
    %cst_26 = arith.constant 0.000000e+00 : f32
    %71 = vector.broadcast %cst_26 : f32 to vector<4x256xf32>
    %72 = arith.select %50, %71, %70 : vector<4x256xi1>, vector<4x256xf32>
    %c20 = arith.constant 20 : index
    %c0_27 = arith.constant 0 : index
    %73 = vector.load %arg6[%c20, %c0_27] : memref<36x256xf32, #tpu.memory_space<vmem>>, vector<4x256xf32>
    tpu.vector_store %arg6[%c20, %c0_27], %72 {strides = array<i32>} : memref<36x256xf32, #tpu.memory_space<vmem>>, vector<4x256xf32>,
    %74 = vector.extract_strided_slice %53 {offsets = [0, 32], sizes = [4, 256], strides = [1, 1]} : vector<4x384xf32> to vector<4x256xf32>
    %cst_28 = arith.constant 0.000000e+00 : f32
    %75 = vector.broadcast %cst_28 : f32 to vector<4x256xf32>
    %76 = arith.select %46, %75, %74 : vector<4x256xi1>, vector<4x256xf32>
    %c24 = arith.constant 24 : index
    %c0_29 = arith.constant 0 : index
    %77 = vector.load %arg6[%c24, %c0_29] : memref<36x256xf32, #tpu.memory_space<vmem>>, vector<4x256xf32>
    tpu.vector_store %arg6[%c24, %c0_29], %76 {strides = array<i32>} : memref<36x256xf32, #tpu.memory_space<vmem>>, vector<4x256xf32>,
    %78 = vector.extract_strided_slice %53 {offsets = [0, 33], sizes = [4, 256], strides = [1, 1]} : vector<4x384xf32> to vector<4x256xf32>
    %c28 = arith.constant 28 : index
    %c0_30 = arith.constant 0 : index
    %79 = vector.load %arg6[%c28, %c0_30] : memref<36x256xf32, #tpu.memory_space<vmem>>, vector<4x256xf32>
    tpu.vector_store %arg6[%c28, %c0_30], %78 {strides = array<i32>} : memref<36x256xf32, #tpu.memory_space<vmem>>, vector<4x256xf32>,
    %80 = vector.extract_strided_slice %53 {offsets = [0, 34], sizes = [4, 256], strides = [1, 1]} : vector<4x384xf32> to vector<4x256xf32>
    %cst_31 = arith.constant 0.000000e+00 : f32
    %81 = vector.broadcast %cst_31 : f32 to vector<4x256xf32>
    %82 = arith.select %50, %81, %80 : vector<4x256xi1>, vector<4x256xf32>
    %c32 = arith.constant 32 : index
    %c0_32 = arith.constant 0 : index
    %83 = vector.load %arg6[%c32, %c0_32] : memref<36x256xf32, #tpu.memory_space<vmem>>, vector<4x256xf32>
    tpu.vector_store %arg6[%c32, %c0_32], %82 {strides = array<i32>} : memref<36x256xf32, #tpu.memory_space<vmem>>, vector<4x256xf32>,
    %c0_33 = arith.constant 0 : index
    %c0_34 = arith.constant 0 : index
    %84 = vector.load %arg6[%c0_33, %c0_34] : memref<36x256xf32, #tpu.memory_space<vmem>>, vector<36x256xf32>
    %cst_35 = arith.constant dense<0.000000e+00> : vector<8x256xf32>
    %85 = tpu.matmul %39, %84, %cst_35 {dimension_numbers = #tpu.dot_dimension_numbers<[1], [0], [0], [1], [0, 0, 1, 1], [], []>} : vector<8x36xf32>, vector<36x256xf32>, vector<8x256xf32> -> vector<8x256xf32>
    %86 = vector.broadcast %51 : vector<8x1xf32> to vector<8x256xf32>
    %87 = arith.addf %85, %86 : vector<8x256xf32>
    %c0_36 = arith.constant 0 : index
    %c0_37 = arith.constant 0 : index
    %c0_38 = arith.constant 0 : index
    %88 = vector.load %arg5[%c0_36, %c0_37, %c0_38] : memref<1x8x256xf32, #tpu.memory_space<vmem>>, vector<1x8x256xf32>
    %89 = vector.shape_cast %88 : vector<1x8x256xf32> to vector<8x256xf32>
    %90 = vector.shape_cast %87 : vector<8x256xf32> to vector<1x8x256xf32>
    tpu.vector_store %arg5[%c0_36, %c0_37, %c0_38], %90 {strides = array<i32>} : memref<1x8x256xf32, #tpu.memory_space<vmem>>, vector<1x8x256xf32>,
    return
  }
  func.func @transform_0(%arg0: i32) -> (i32, i32) {
    %c0_i32 = arith.constant 0 : i32
    %c0_i32_0 = arith.constant 0 : i32
    %c0_i32_1 = arith.constant 0 : i32
    return %c0_i32, %c0_i32_0 : i32, i32
  }
  func.func @transform_1(%arg0: i32) -> (i32, i32) {
    %c0_i32 = arith.constant 0 : i32
    %c0_i32_0 = arith.constant 0 : i32
    %c0_i32_1 = arith.constant 0 : i32
    return %c0_i32, %c0_i32_0 : i32, i32
  }
  func.func @transform_2(%arg0: i32) -> (i32, i32) {
    %c0_i32 = arith.constant 0 : i32
    %c0_i32_0 = arith.constant 0 : i32
    %c0_i32_1 = arith.constant 0 : i32
    return %c0_i32, %c0_i32_0 : i32, i32
  }
  func.func @transform_3(%arg0: i32) -> (i32, i32, i32) {
    %c0_i32 = arith.constant 0 : i32
    %c0_i32_0 = arith.constant 0 : i32
    %c0_i32_1 = arith.constant 0 : i32
    return %arg0, %c0_i32, %c0_i32_0 : i32, i32, i32
  }
  func.func @transform_4(%arg0: i32) -> (i32, i32, i32) {
    %c0_i32 = arith.constant 0 : i32
    %c0_i32_0 = arith.constant 0 : i32
    %c0_i32_1 = arith.constant 0 : i32
    return %arg0, %c0_i32, %c0_i32_0 : i32, i32, i32
  }
}

</mosaic_0001>

<bundles_post_ra>
// kernel: spectral_norm_conv_forward.1
= control target key start
LH: loop header
LB: loop body
LE: loop exit
PB: predicated region body
PF: predicated region fallthrough
CT: control target
= control target key end

     0   :  { %s686_s15 = smov 0   ;;  %s822_s0 = inlined_call_operand.vmem [shape: f32[8,36], index: 0, kind: input, shape index: {}]   ;;  %s823_s1 = inlined_call_operand.vmem [shape: f32[8,1], index: 1, kind: input, shape index: {}]   ;;  %s824_s2 = inlined_call_operand.vmem [shape: f32[8,1], index: 2, kind: input, shape index: {}]   ;;  %s825_s3 = inlined_call_operand.vmem [shape: f32[2,4,384], index: 3, kind: input, shape index: {}]   ;;  %s826_s4 = inlined_call_operand.vmem [shape: f32[2,8,256], index: 4, kind: output, shape index: {}]  }
   0x1 LB: > { %s579_s16 = sadd.s32 4294967295, %s649_s15   ;;  %p583_p0 = scmp.ge.s32.totalorder %s649_s15, 1  ;;  %s649_s15 = sphi %s686_s15, %s14_s15  }
   0x2   : > { %p162_p1 = scmp.lt.s32.totalorder %s649_s15, 3 }
   0x4   : > { %p163_p2 = pnand %p583_p0, %p162_p1 }
   0x5   : > { %v199_v0 = vld [vmem:[%s823_s1] sm:$0xff] (!%p163_p2)  ;;  %v651_v1 = vmov (!%p163_p2), 0   ;;  %vm206_vm0 = vcmask (!%p163_p2), 293888   ;;  %vm215_vm1 = vcmask (!%p163_p2), 286720   ;;  %vm237_vm2 = vcmask (!%p163_p2), 7168   ;;  %p188_p3 = scmp.lt.s32.totalorder (!%p163_p2), %s579_s16, 1 }
   0x6   : > { %166 = sbr.rel (%p163_p2) target bundleno = 1331 (0x533), region = 36  ;;  %632 = vset.pattern.permute.xlu0 (!%p163_p2), %v651_v1  ;;  %633 = vset.pattern.permute.xlu1 (!%p163_p2), %v651_v1  ;;  %v700_v2 = vld [vmem:[%s822_s0] sm:$0xff] (!%p163_p2)  ;;  %s652_s28 = smov (!%p163_p2), 126   ;;  %v270_v46 = vlaneseq (!%p163_p2)  ;;  %vm368_vm5 = vcmask (!%p163_p2), 900096   ;;  %vm417_vm7 = vcmask (!%p163_p2), 769024   ;;  %vm334_vm8 = vcmask (!%p163_p2), 916480  }
   0x7   : > { %202 = vperm.xlu0 (!%p163_p2), %632, %v199_v0   ;;  %s653_s29 = smov (!%p163_p2), 110   ;;  %s654_s30 = smov (!%p163_p2), 96   ;;  %vm319_vm9 = vcmask (!%p163_p2), 1031168   ;;  %vm306_vm11 = vcmask (!%p163_p2), 1039360   ;;  %vm389_vm12 = vcmask (!%p163_p2), 785408   ;;  %vm355_vm13 = vcmask (!%p163_p2), 908288  }
   0x8   : > { %s655_s7 = smov (!%p163_p2), 111   ;;  %s656_s8 = smov (!%p163_p2), 95   ;;  %v271_v47 = vand.u32 (!%p163_p2), 127, %v270_v46  ;;  %vm404_vm14 = vcmask (!%p163_p2), 777216   ;;  %vm444_vm15 = vcmask (!%p163_p2), 1043456  }
   0x9   : > { %s657_s9 = smov (!%p163_p2), 94   ;;  %s658_s11 = smov (!%p163_p2), 112  }
   0xa   : > { %v728_v48 = vadd.s32 (!%p163_p2), 128, %v271_v47  ;;  %v273_v49 = vand.u32 (!%p163_p2), 15, %v271_v47  ;;  %s659_s12 = smov (!%p163_p2), 127  }
   0xc   : > { %v274_v50 = vand.u32 (!%p163_p2), 15, %v728_v48  ;;  %vm731_vm3 = vcmp.lt.s32.totalorder (!%p163_p2), %v273_v49, 1  ;;  %vm755_vm6 = vcmp.ge.s32.totalorder (!%p163_p2), %v273_v49, 15 }
   0xd   : > { %s836_s16 = smov (!%p188_p3, %s579_s16), 1 }
   0xe   : > { %s601_s24 = smul.u32 12, %s836_s16  ;;  %vm739_vm4 = vcmp.lt.s32.totalorder %v274_v50, 1  ;;  %vm786_vm10 = vcmp.ge.s32.totalorder %v274_v50, 15  ;;  %s592_s19 = sshll.u32 %s836_s16, 4 }
  0x10   : > { %s192_s27 = scalar_lea.vmem %s825_s3, %s601_s24 }
  0x11   : > { %v288_v37 = vld [vmem:[%s192_s27] sm:$0xff]  ;;  %v289_v39 = vld [vmem:[%s192_s27 + $0x8] sm:$0xf] }
  0x12   : > { %v291_v38 = vcombine.high %v288_v37, %v288_v37  ;;  %v299_v52 = vcombine.low %v289_v39, %v289_v39  ;;  %v293_v53 = vsel %vm731_vm3, 0.0, %v288_v37  ;;  %v298_v56 = vcombine.low %v288_v37, %v288_v37 }
  0x13   : > { %295 = vst [vmem:[#allocation2] sm:$0xf] %v293_v53 }
  0x14   : > { %v294_v55 = vsel %vm739_vm4, 0.0, %v291_v38 }
  0x15   : > { %296 = vst [vmem:[#allocation2 + $0x8] sm:$0xf] %v294_v55 }
  0x86   : > { %v203_v3 = vpop.permute.xlu0 %202 }
  0x87   : > { %v205_v4 = vmul.f32 %v203_v3, %v700_v2 }
  0x89   : > { %v207_v5 = vsel %vm206_vm0, %v205_v4, 0.0 }
  0x8a   : > { %v208_v6 = vrot.slane %v207_v5, 4 }
  0x8c   : > { %v209_v7 = vadd.f32 %v208_v6, %v207_v5 }
  0x8e   : > { %v210_v8 = vrot.slane %v209_v7, 2 }
  0x90   : > { %v211_v9 = vadd.f32 %v210_v8, %v209_v7 }
  0x92   : > { %v212_v10 = vrot.slane %v211_v9, 1 }
  0x94   : > { %v213_v11 = vadd.f32 %v212_v10, %v211_v9  ;;  %v660_v9 = vmov 0.0  }
  0x95   : > { %515 = vmatprep.mubr.f32.mxu0 %v660_v9 }
  0x96   : > { %v214_v12 = vmul.f32 %v213_v11, %v213_v11 }
  0x98   : > { %v216_v13 = vsel %vm215_vm1, %v214_v12, 0.0 }
  0x99   : > { %217 = vadd.xlane.f32.xlu0 %v216_v13 }
  0xaf   : > { %315 = vrot.lane.b32.xlu0 %v291_v38, %s652_s28 }
  0xb3   : > { %364 = vrot.lane.b32.xlu0 %v291_v38, %s653_s29 }
  0xb7   : > { %362 = vrot.lane.b32.xlu0 %v288_v37, %s653_s29 }
  0xbb   : > { %387 = vrot.lane.b32.xlu0 %v289_v39, %s654_s30 }
  0xbf   : > { %353 = vrot.lane.b32.xlu0 %v289_v39, %s655_s7 }
  0xc3   : > { %400 = vrot.lane.b32.xlu0 %v288_v37, %s656_s8 }
  0xc7   : > { %349 = vrot.lane.b32.xlu0 %v288_v37, %s655_s7 }
  0xcb   : > { %413 = vrot.lane.b32.xlu0 %v291_v38, %s657_s9 }
  0xcf   : > { %411 = vrot.lane.b32.xlu0 %v288_v37, %s657_s9 }
 0x126   : > { %v218_v14 = vpop.xlane.xlu0 %217 }
 0x127   : > { %v219_v15 = vrot.slane %v218_v14, 4 }
 0x129   : > { %v220_v16 = vadd.f32 %v219_v15, %v218_v14 }
 0x12a   : > { %v316_v57 = vpop.permute.xlu0 %315 }
 0x12b   : > { %v221_v17 = vrot.slane %v220_v16, 2 }
 0x12d   : > { %v222_v18 = vadd.f32 %v221_v17, %v220_v16 }
 0x12e   : > { %v753_v58 = vpop.permute.xlu0 %364 }
 0x12f   : > { %v223_v19 = vrot.slane %v222_v18, 1 }
 0x131   : > { %v224_v20 = vadd.f32 %v223_v19, %v222_v18 }
 0x132   : > { %v363_v59 = vpop.permute.xlu0 %362 }
 0x133   : > { %602 = vpush %v224_v20  ;;  %v369_v61 = vsel %vm368_vm5, %v363_v59, %v753_v58 }
 0x134   : > { %v373_v62 = vsel %vm755_vm6, 0.0, %v369_v61 }
 0x135   : > { %v377_v63 = vrot.slane %v373_v62, 4 }
 0x136   : > { %v763_v0 = vpop.permute.xlu0 %387 }
 0x137   : > { %381 = vst [vmem:[#allocation2 + $0x20] sm:$0xf0] %v377_v63 }
 0x13a   : > { %v765_v1 = vpop.permute.xlu0 %353 }
 0x13e   : > { %v767_v3 = vpop.permute.xlu0 %400 }
 0x142   : > { %v769_v4 = vpop.permute.xlu0 %349 }
 0x146   : > { %v771_v5 = vpop.permute.xlu0 %413 }
 0x14a   : > { %v412_v6 = vpop.permute.xlu0 %411 }
 0x14b   : > { %v418_v7 = vsel %vm417_vm7, %v412_v6, %v771_v5 }
 0x14c   : > { %v422_v8 = vsel %vm755_vm6, 0.0, %v418_v7 }
 0x14d   : > { %424 = vst [vmem:[#allocation2 + $0x40] sm:$0xf] %v422_v8 }
 0x164   : > { %s603_s21 = spop %602 }
 0x165   : > { %s226_s22 = sadd.f32 1e-24, %s603_s21 }
 0x167   : > { %v227_v21 = vstv %s226_s22  ;;  %s197_s22 = scalar_lea.vmem %s826_s4, %s592_s19 }
 0x168   : > { %637 = vrsqrt.f32 %v227_v21 }
 0x172   : > { %v638_v22 = vpop.eup %637 }
 0x173   : > { %604 = vpush %v638_v22 }
 0x1a4   : > { %s605_s23 = spop %604 }
 0x1a5   : > { %v230_v23 = vstv %s605_s23 }
 0x1a6   : > { %v231_v24 = vmul.f32 %v230_v23, %v213_v11  ;;  %v287_v11 = vld [vmem:[%s824_s2] sm:$0xff] }
 0x1a8   : > { %v232_v25 = vmul.f32 %v231_v24, %v700_v2 }
 0x1aa   : > { %v233_v26 = vsel %vm206_vm0, %v232_v25, 0.0 }
 0x1ab   : > { %234 = vadd.xlane.f32.xlu1 %v233_v26 }
 0x238   : > { %v235_v27 = vpop.xlane.xlu1 %234 }
 0x239   : > { %v236_v28 = vmul.f32 %v235_v27, %v235_v27 }
 0x23b   : > { %v238_v29 = vsel %vm237_vm2, %v236_v28, 0.0 }
 0x23c   : > { %239 = vadd.xlane.f32.xlu1 %v238_v29 }
 0x2c9   : > { %v240_v30 = vpop.xlane.xlu1 %239 }
 0x2ca   : > { %v241_v31 = vrot.slane %v240_v30, 4 }
 0x2cc   : > { %v242_v32 = vadd.f32 %v241_v31, %v240_v30 }
 0x2ce   : > { %v243_v33 = vrot.slane %v242_v32, 2 }
 0x2d0   : > { %v244_v34 = vadd.f32 %v243_v33, %v242_v32 }
 0x2d2   : > { %v245_v35 = vrot.slane %v244_v34, 1 }
 0x2d4   : > { %v246_v36 = vadd.f32 %v245_v35, %v244_v34 }
 0x2d6   : > { %606 = vpush %v246_v36 }
 0x307   : > { %s607_s5 = spop %606 }
 0x308   : > { %s248_s6 = sadd.f32 1e-24, %s607_s5 }
 0x30a   : > { %v249_v40 = vstv %s248_s6 }
 0x30b   : > { %639 = vrsqrt.f32 %v249_v40 }
 0x315   : > { %v640_v41 = vpop.eup %639 }
 0x316   : > { %608 = vpush %v640_v41 }
 0x347   : > { %s609_s10 = spop %608 }
 0x348   : > { %v252_v42 = vstv %s609_s10 }
 0x349   : > { %v253_v43 = vmul.f32 %v252_v42, %v235_v27 }
 0x34b   : > { %v254_v44 = vmul.f32 %v253_v43, %v235_v27 }
 0x34d   : > { %v255_v45 = vsel %vm237_vm2, %v254_v44, 0.0 }
 0x34e   : > { %256 = vadd.xlane.f32.xlu1 %v255_v45 }
 0x35f   : > { %330 = vrot.lane.b32.xlu1 %v291_v38, %s658_s11 }
 0x363   : > { %332 = vrot.lane.b32.xlu1 %v289_v39, %s658_s11 }
 0x367   : > { %328 = vrot.lane.b32.xlu1 %v288_v37, %s658_s11 }
 0x36b   : > { %317 = vrot.lane.b32.xlu1 %v289_v39, %s652_s28 }
 0x36f   : > { %302 = vrot.lane.b32.xlu1 %v288_v37, %s659_s12 }
 0x373   : > { %304 = vrot.lane.b32.xlu1 %v299_v52, %s659_s12 }
 0x377   : > { %313 = vrot.lane.b32.xlu1 %v288_v37, %s652_s28 }
 0x37b   : > { %300 = vrot.lane.b32.xlu1 %v298_v56, %s659_s12 }
 0x37f   : > { %366 = vrot.lane.b32.xlu1 %v289_v39, %s653_s29 }
 0x383   : > { %385 = vrot.lane.b32.xlu1 %v291_v38, %s654_s30 }
 0x387   : > { %351 = vrot.lane.b32.xlu1 %v291_v38, %s655_s7 }
 0x38b   : > { %383 = vrot.lane.b32.xlu1 %v288_v37, %s654_s30 }
 0x38f   : > { %402 = vrot.lane.b32.xlu1 %v299_v52, %s656_s8 }
 0x393   : > { %398 = vrot.lane.b32.xlu1 %v298_v56, %s656_s8 }
 0x397   : > { %415 = vrot.lane.b32.xlu1 %v289_v39, %s657_s9 }
 0x39b   : > { %438 = vperm.xlu1 %633, %v287_v11  }
 0x3db   : > { %v257_v10 = vpop.xlane.xlu1 %256 }
 0x3dc   : > { %v258_v12 = vrot.slane %v257_v10, 4 }
 0x3de   : > { %v259_v13 = vadd.f32 %v258_v12, %v257_v10  ;;  %v434_v10 = vld [vmem:[#allocation2 + $0x40] sm:$0xf] }
 0x3df   : > { %v331_v14 = vpop.permute.xlu1 %330 }
 0x3e0   : > { %v260_v15 = vrot.slane %v259_v13, 2 }
 0x3e2   : > { %v261_v16 = vadd.f32 %v260_v15, %v259_v13 }
 0x3e3   : > { %v333_v17 = vpop.permute.xlu1 %332 }
 0x3e4   : > { %v262_v18 = vrot.slane %v261_v16, 1  ;;  %v336_v19 = vsel %vm334_vm8, %v331_v14, %v333_v17 }
 0x3e5   : > { %v340_v20 = vsel %vm739_vm4, 0.0, %v336_v19 }
 0x3e6   : > { %v263_v21 = vadd.f32 %v262_v18, %v261_v16  ;;  %v344_v22 = vrot.slane %v340_v20, 4 }
 0x3e7   : > { %v329_v23 = vpop.permute.xlu1 %328 }
 0x3e8   : > { %610 = vpush %v263_v21  ;;  %348 = vst [vmem:[#allocation2 + $0x18] sm:$0xf0] %v344_v22  ;;  %v335_v24 = vsel %vm334_vm8, %v329_v23, %v331_v14 }
 0x3e9   : > { %v339_v25 = vsel %vm731_vm3, 0.0, %v335_v24 }
 0x3ea   : > { %v343_v26 = vrot.slane %v339_v25, 4 }
 0x3eb   : > { %v318_v28 = vpop.permute.xlu1 %317 }
 0x3ec   : > { %347 = vst [vmem:[#allocation2 + $0x10] sm:$0xf0] %v343_v26  ;;  %v321_v29 = vsel %vm319_vm9, %v316_v57, %v318_v28 }
 0x3ed   : > { %v325_v30 = vsel %vm786_vm10, 0.0, %v321_v29 }
 0x3ee   : > { %327 = vst [vmem:[#allocation2 + $0x18] sm:$0xf] %v325_v30 }
 0x3ef   : > { %v303_v31 = vpop.permute.xlu1 %302 }
 0x3f3   : > { %v305_v32 = vpop.permute.xlu1 %304 }
 0x3f4   : > { %v308_v33 = vsel %vm306_vm11, %v303_v31, %v305_v32 }
 0x3f5   : > { %312 = vst [vmem:[#allocation2 + $0x8] sm:$0xf0] %v308_v33  ;;  %v429_v37 = vld [vmem:[#allocation2 + $0x18] sm:$0xff] }
 0x3f7   : > { %v314_v34 = vpop.permute.xlu1 %313 }
 0x3f8   : > { %v320_v35 = vsel %vm319_vm9, %v314_v34, %v316_v57 }
 0x3f9   : > { %v324_v36 = vsel %vm755_vm6, 0.0, %v320_v35 }
 0x3fa   : > { %326 = vst [vmem:[#allocation2 + $0x10] sm:$0xf] %v324_v36 }
 0x3fb   : > { %v301_v38 = vpop.permute.xlu1 %300 }
 0x3fc   : > { %v307_v39 = vsel %vm306_vm11, %v301_v38, %v303_v31  ;;  %v427_v40 = vld [vmem:[#allocation2 + $0x8] sm:$0xff] }
 0x3fd   : > { %311 = vst [vmem:[#allocation2] sm:$0xf0] %v307_v39  ;;  %v593_v41 = vpack.c.bf16 %v429_v37, %v427_v40 }
 0x3ff   : > { %v367_v42 = vpop.permute.xlu1 %366  ;;  %594 = vmatprep.subr.bf16.mxu0 %v593_v41 }
 0x400   : > { %v370_v43 = vsel %vm368_vm5, %v753_v58, %v367_v42 }
 0x401   : > { %v374_v44 = vsel %vm786_vm10, 0.0, %v370_v43  ;;  %v428_v46 = vld [vmem:[#allocation2 + $0x10] sm:$0xff] }
 0x402   : > { %v378_v45 = vrot.slane %v374_v44, 4 }
 0x403   : > { %v386_v47 = vpop.permute.xlu1 %385 }
 0x404   : > { %382 = vst [vmem:[#allocation2 + $0x28] sm:$0xf0] %v378_v45  ;;  %v426_v48 = vld [vmem:[#allocation2] sm:$0xff]  ;;  %v391_v49 = vsel %vm389_vm12, %v386_v47, %v763_v0 }
 0x405   : > { %v595_v50 = vpack.c.bf16 %v428_v46, %v426_v48  ;;  %v395_v52 = vsel %vm739_vm4, 0.0, %v391_v49 }
 0x406   : > { %397 = vst [vmem:[#allocation2 + $0x38] sm:$0xf] %v395_v52 }
 0x407   : > { %596 = vmatpush1.bf16.msra.mxu0 %v595_v50  ;;  %v352_v53 = vpop.permute.xlu1 %351 }
 0x408   : > { %v357_v55 = vsel %vm355_vm13, %v352_v53, %v765_v1  ;;  %v356_v56 = vsel %vm355_vm13, %v769_v4, %v352_v53 }
 0x409   : > { %361 = vst [vmem:[#allocation2 + $0x28] sm:$0xf] %v357_v55  ;;  %360 = vst [vmem:[#allocation2 + $0x20] sm:$0xf] %v356_v56 }
 0x40b   : > { %v384_v57 = vpop.permute.xlu1 %383 }
 0x40c   : > { %v390_v58 = vsel %vm389_vm12, %v384_v57, %v386_v47 }
 0x40d   : > { %v394_v59 = vsel %vm731_vm3, 0.0, %v390_v58 }
 0x40e   : > { %396 = vst [vmem:[#allocation2 + $0x30] sm:$0xf] %v394_v59 }
 0x40f   : > { %v403_v54 = vpop.permute.xlu1 %402 }
 0x410   : > { %v406_v60 = vsel %vm404_vm14, %v767_v3, %v403_v54  ;;  %v431_v63 = vld [vmem:[#allocation2 + $0x28] sm:$0xff]  ;;  %v430_v8 = vld [vmem:[#allocation2 + $0x20] sm:$0xff] }
 0x411   : > { %410 = vst [vmem:[#allocation2 + $0x38] sm:$0xf0] %v406_v60 }
 0x413   : > { %v399_v61 = vpop.permute.xlu1 %398 }
 0x414   : > { %v405_v62 = vsel %vm404_vm14, %v399_v61, %v767_v3 }
 0x415   : > { %409 = vst [vmem:[#allocation2 + $0x30] sm:$0xf0] %v405_v62 }
 0x417   : > { %v416_v0 = vpop.permute.xlu1 %415 }
 0x418   : > { %v433_v1 = vld [vmem:[#allocation2 + $0x38] sm:$0xff]  ;;  %v419_v4 = vsel %vm417_vm7, %v771_v5, %v416_v0 }
 0x419   : > { %s611_s17 = spop %610  ;;  %v597_v6 = vpack.c.bf16 %v433_v1, %v431_v63  ;;  %v423_v51 = vsel %vm786_vm10, 0.0, %v419_v4 }
 0x41a   : > { %v265_v7 = vstv %s611_s17  ;;  %425 = vst [vmem:[#allocation2 + $0x48] sm:$0xf] %v423_v51 }
 0x41b   : > { %641 = vrcp.f32 %v265_v7  ;;  %598 = vmatprep.subr.bf16.mxu0 %v597_v6  ;;  %v439_v14 = vpop.permute.xlu1 %438 }
 0x41c   : > { %v432_v9 = vld [vmem:[#allocation2 + $0x30] sm:$0xff] }
 0x41d   : > { %v599_v3 = vpack.c.bf16 %v432_v9, %v430_v8 }
 0x41f   : > { %600 = vmatpush1.bf16.msra.mxu0 %v599_v3 }
 0x421   : > { %v435_v11 = vld [vmem:[#allocation2 + $0x48] sm:$0xf] }
 0x422   : > { %587 = vmatprep.subr.msk.mxu0 %vm444_vm15, %v435_v11 }
 0x423   : > { %588 = vmatpush1.msk.msra.mxu0 %vm444_vm15, %v434_v10 }
 0x425   : > { %v642_v5 = vpop.eup %641 }
 0x426   : > { %612 = vpush %v642_v5 }
 0x457   : > { %s613_s18 = spop %612 }
 0x458   : > { %v268_v12 = vstv %s613_s18 }
 0x459   : > { %v269_v13 = vmul.f32 %v268_v12, %v700_v2 }
 0x45b   : > { %589 = vmatmul.mubr.msk.f32.vlgmr.msra.gmra.mrb[0].mxu0 %vm206_vm0, %v269_v13 }
 0x52e   : > { %v517_v15 = vpop.f32.mrb[0].mxu0 }
 0x52f   : > { %v518_v16 = vadd.f32 %v517_v15, %v439_v14  ;;  %v519_v17 = vpop.f32.mrb[1].mxu0 }
 0x530   : > { %v520_v18 = vadd.f32 %v519_v17, %v439_v14 }
 0x531   : > { %522 = vst [vmem:[%s197_s22] sm:$0xff] %v518_v16 }
 0x532   : > { %523 = vst [vmem:[%s197_s22 + $0x8] sm:$0xff] %v520_v18 }
 0x533 PF: > { %s14_s15 = sadd.s32 1, %s649_s15  }
 0x534   : > { %p11_p4 = scmp.ge.s32.totalorder %s14_s15, 4  }
 0x536   :  { %13 = sbr.rel (!%p11_p4) target bundleno = 1 (0x1), region = 66 }

</bundles_post_ra>
